<compile_context>
chip_gen: v5e
topology: v5e:2x2
jax: 0.10.0
libtpu: 0.0.40
codegen_flags: <defaults>
</compile_context>

<pallas_src>
import jax
import jax.numpy as jnp
from jax.experimental import pallas as pl
from jax.experimental.pallas import tpu as pltpu


_MAX_BLOCK_BYTES = 4 * 1024 * 1024            # per-block target (~4 MiB)
_MIN_BLOCK_BYTES = 512 * 1024                 # don't split below ~512 KiB / block
_MAX_RAGGED_SINGLE_BLOCK_BYTES = 512 * 1024   # ragged arrays up to this run as one block
_VMEM_LIMIT_BYTES = 32 * 1024 * 1024          # explicit scoped-VMEM limit (safe on v5e/v6e/v7x)


def _add_const_kernel(x_ref, z_ref):
    # Hot path: elementwise add of a constant on the VPU.
    z_ref[...] = x_ref[...] + jnp.float32(10.0)


def _choose_lanes(n: int) -> int:
    """Widest lane dim (multiple of 128) dividing n."""
    for lanes in (4096, 2048, 1024, 512, 256, 128):
        if n % lanes == 0:
            return lanes
    raise ValueError("n must be a multiple of 128 on this path")


def _choose_block_rows(rows: int, lanes: int) -> int:
    """Evenly-sized blocks: <= ~4 MiB each, >= 2 blocks when each stays >= ~512 KiB."""
    bytes_per_row = lanes * 4
    max_rows = max(8, (_MAX_BLOCK_BYTES // bytes_per_row) // 8 * 8)
    n_blocks = pl.cdiv(rows, max_rows)
    if n_blocks == 1:
        # Force >= 2 blocks (pipelining + v7x two-TC split) for mid-size arrays.
        min_rows = max(8, (_MIN_BLOCK_BYTES // bytes_per_row) // 8 * 8)
        if rows >= 2 * min_rows:
            n_blocks = 2
    if n_blocks == 1:
        return rows  # tiny input: one block covering the whole array
    # Even split, sublane dim kept a multiple of 8 (no near-empty tail block).
    block_rows = ((pl.cdiv(rows, n_blocks) + 7) // 8) * 8
    return min(block_rows, rows)


# Semantics that failed to compile on this chip/jax build (so we only pay the
# failed-compile cost once, then stick to the working fallback).
_failed_semantics = set()


def _semantics_candidates(num_blocks: int):
    if num_blocks <= 1:
        return [("arbitrary",)]
    cands = []
    core_parallel = getattr(pltpu, "CORE_PARALLEL", None)
    if core_parallel is not None:
        cands.append((core_parallel,))     # real 2-TC split on v7x
    cands.append(("parallel",))
    cands.append(("arbitrary",))
    return cands


def _run_2d(x2d, block_shape, grid, donate):
    rows, lanes = x2d.shape
    extra = {"input_output_aliases": {0: 0}} if donate else {}

    cands = _semantics_candidates(grid[0])
    cands = [c for c in cands if tuple(map(str, c)) not in _failed_semantics]
    if not cands:
        cands = [("arbitrary",)]

    for idx, sem in enumerate(cands):
        is_last = idx == len(cands) - 1
        try:
            return pl.pallas_call(
                _add_const_kernel,
                out_shape=jax.ShapeDtypeStruct((rows, lanes), jnp.float32),
                grid=grid,
                in_specs=[pl.BlockSpec(block_shape, lambda i: (i, 0))],
                out_specs=pl.BlockSpec(block_shape, lambda i: (i, 0)),
                compiler_params=pltpu.CompilerParams(
                    dimension_semantics=sem,
                    vmem_limit_bytes=_VMEM_LIMIT_BYTES,
                ),
                **extra,
            )(x2d)
        except Exception:
            _failed_semantics.add(tuple(map(str, sem)))
            if is_last:
                raise


def add_ten(x: jax.Array, *, donate: bool = False) -> jax.Array:
    assert x.dtype == jnp.float32, "kernel expects float32 like the Triton ref"
    orig_shape = x.shape
    n = x.size
    if n == 0:
        return x

    flat = x.reshape(-1)  # free for a contiguous array

    if n % 128 != 0:
        if n * 4 <= _MAX_RAGGED_SINGLE_BLOCK_BYTES:
            # Small ragged array: one block equal to the full array shape
            # (always legal) -> no pad, no slice, donation still works.
            out = _run_2d(flat.reshape(1, n), (1, n), (1,), donate)
            return out.reshape(orig_shape)
        # Rare large-ragged path: kernel over the 128-aligned bulk, tiny
        # (<128-element) tail handled by plain XLA, single concat at the end.
        bulk = (n // 128) * 128
        out_bulk = add_ten(flat[:bulk]).reshape(-1)
        out_tail = flat[bulk:] + jnp.float32(10.0)
        return jnp.concatenate([out_bulk, out_tail]).reshape(orig_shape)

    lanes = _choose_lanes(n)
    rows = n // lanes
    block_rows = _choose_block_rows(rows, lanes)
    grid = (pl.cdiv(rows, block_rows),)   # partial last block masked by Pallas
    out2d = _run_2d(flat.reshape(rows, lanes), (block_rows, lanes), grid, donate)
    return out2d.reshape(orig_shape)


if __name__ == "__main__":
    key = jax.random.PRNGKey(0)
    k0, k1, k2, k3 = jax.random.split(key, 4)

    # Primary test: shape consistent with the module's forward (flat f32 add).
    x = jax.random.normal(k0, (2, 4, 16, 16), dtype=jnp.float32)
    out = add_ten(x)
    jax.block_until_ready(out)
    assert out.shape == x.shape and out.dtype == x.dtype
    assert jnp.allclose(out, x + 10.0, atol=1e-6), "mismatch vs reference (primary)"

    # Multi-block path with an evenly-split grid and a masked last block.
    y = jax.random.normal(k1, (8204, 128), dtype=jnp.float32)
    out_y = add_ten(y)
    jax.block_until_ready(out_y)
    assert jnp.allclose(out_y, y + 10.0, atol=1e-6), "mismatch vs reference (multi-block)"

    # Mid-size array: forced >=2-block split (pipelining / v7x 2-TC path).
    w = jax.random.normal(k3, (1024, 512), dtype=jnp.float32)
    out_w = add_ten(w)
    jax.block_until_ready(out_w)
    assert jnp.allclose(out_w, w + 10.0, atol=1e-6), "mismatch vs reference (split)"

    # Ragged element count (not a multiple of 128): full-shape block, no pad.
    z = jax.random.normal(k2, (3, 5, 7), dtype=jnp.float32)
    out_z = add_ten(z)
    jax.block_until_ready(out_z)
    assert jnp.allclose(out_z, z + 10.0, atol=1e-6), "mismatch vs reference (ragged)"

    print("KERNEL_OK")
</pallas_src>

<mosaic_0001>
module attributes {stable_mosaic.version = 11 : i64} {
  func.func @_add_const_kernel(%arg0: i32, %arg1: memref<1x2048xf32, #tpu.memory_space<vmem>>, %arg2: memref<1x2048xf32, #tpu.memory_space<vmem>>) attributes {dimension_semantics = [#tpu.dimension_semantics<arbitrary>], iteration_bounds = array<i64: 1>, scalar_prefetch = 0 : i64, scratch_operands = 0 : i64, tpu.core_type = #tpu.core_type<tc>, window_params = [{transform_indices = @transform_0, window_bounds = array<i64: 1, 2048>}, {transform_indices = @transform_1, window_bounds = array<i64: 1, 2048>}]} {
    %c0 = arith.constant 0 : index
    %c0_0 = arith.constant 0 : index
    %0 = vector.load %arg1[%c0, %c0_0] : memref<1x2048xf32, #tpu.memory_space<vmem>>, vector<1x2048xf32>
    %cst = arith.constant 1.000000e+01 : f32
    %1 = vector.broadcast %cst : f32 to vector<1x2048xf32>
    %2 = arith.addf %0, %1 : vector<1x2048xf32>
    %c0_1 = arith.constant 0 : index
    %c0_2 = arith.constant 0 : index
    %3 = vector.load %arg2[%c0_1, %c0_2] : memref<1x2048xf32, #tpu.memory_space<vmem>>, vector<1x2048xf32>
    tpu.vector_store %arg2[%c0_1, %c0_2], %2 {strides = array<i32>} : memref<1x2048xf32, #tpu.memory_space<vmem>>, vector<1x2048xf32>,
    return
  }
  func.func @transform_0(%arg0: i32) -> (i32, i32) {
    %c0_i32 = arith.constant 0 : i32
    %c0_i32_0 = arith.constant 0 : i32
    return %arg0, %c0_i32 : i32, i32
  }
  func.func @transform_1(%arg0: i32) -> (i32, i32) {
    %c0_i32 = arith.constant 0 : i32
    %c0_i32_0 = arith.constant 0 : i32
    return %arg0, %c0_i32 : i32, i32
  }
}

</mosaic_0001>

<bundles_post_ra>
// kernel: tpu_custom_call.1
= control target key start
LH: loop header
LB: loop body
LE: loop exit
PB: predicated region body
PF: predicated region fallthrough
CT: control target
= control target key end

     0   :  { %6 = vsyncpa [#allocation3], 0  ;;  %s118_s0 = inlined_call_operand.hbm [shape: f32[1,2048], index: 0, kind: input, shape index: {}]   ;;  %s119_s1 = inlined_call_operand.hbm [shape: f32[1,2048], index: 1, kind: output, shape index: {}]  }
   0x1   :  { %7 = vsyncpa [#allocation4], 0  ;;  %s13_s8 = sshll.u32 %s118_s0, 4  ;;  %s100_s9 = smov [#allocation2]   ;;  %s14_s8 = int_to_ptr.hbm [resolvable:$true] %s13_s8 }
   0x2   :  { %s15_s10 = sshll.u32 %s100_s9, 4  ;;  %s16_s10 = int_to_ptr.vmem [resolvable:$true] %s15_s10 }
   0x3   :  { %18 = dma.hbm_to_vmem [thread:$0]  %s14_s8, 256, %s16_s10, [#allocation3]  }
   0x4   :  { %96 = dma.done.wait [#allocation3], 256  }
   0x5   :  { %97 = vsyncadd [#allocation3], 4294967040  ;;  %s101_s11 = smov [#allocation5]   ;;  %s36_s15 = sshll.u32 %s119_s1, 4  ;;  %v23_v0 = vld [vmem:[#allocation2] sm:$0xff]  ;;  %v24_v1 = vld [vmem:[#allocation2 + $0x8] sm:$0xff]  ;;  %s37_s15 = int_to_ptr.hbm [resolvable:$true] %s36_s15 }
   0x6   :  { %s34_s12 = sshll.u32 %s101_s11, 4  ;;  %v25_v2 = vadd.f32 10.0, %v23_v0  ;;  %v26_v3 = vadd.f32 10.0, %v24_v1  ;;  %s35_s12 = int_to_ptr.vmem [resolvable:$true] %s34_s12 }
   0x8   :  { %27 = vst [vmem:[#allocation5] sm:$0xff] %v25_v2 }
   0x9   :  { %28 = vst [vmem:[#allocation5 + $0x8] sm:$0xff] %v26_v3 }
   0xa   :  { %39 = dma.vmem_to_hbm [thread:$0]  %s35_s12, 256, %s37_s15, [#allocation4]  }
   0xb   :  { %98 = dma.done.wait [#allocation4], 256  }
   0xc   :  { %99 = vsyncadd [#allocation4], 4294967040 }
   0xd   :  { %44 = vsyncpa [#allocation3], 1 }
   0xe   :  { %45 = vsyncpa [#allocation4], 1 }

</bundles_post_ra>
